<compile_context>
chip_gen: v6e
topology: v6e:2x2x1
jax: 0.10.0
libtpu: 0.0.40
codegen_flags: <defaults>
</compile_context>

<pallas_src>
import functools

import jax
import jax.numpy as jnp
from jax.experimental import pallas as pl
from jax.experimental.pallas import tpu as pltpu

LAYER_SIZES = [784, 128, 128, 10]
_LANE = 128


def _round_up(x, m):
    return (x + m - 1) // m * m


def _fused_resnet_kernel(seed_ref, *refs, noise_scale, use_bf16, residual_flags):
    """Whole network in one body: chain of (linear -> +noise -> relu -> +noise -> +id)."""
    n_layers = len(residual_flags)
    x_ref = refs[0]
    wb_refs = refs[1:1 + 2 * n_layers]            # (w0, b0, w1, b1, ...)
    o_ref = refs[1 + 2 * n_layers]

    noise_on = noise_scale != 0.0                 # trace-time constant

    def uniform_pm1(shape):
        # Uniform in [-1, 1) via mantissa bitcast: no uint32->f32 convert needed.
        # NOTE: requires a real TPU (hardware PRNG); only traced when noise_on.
        bits = pltpu.bitcast(pltpu.prng_random_bits(shape), jnp.uint32)
        u12 = pltpu.bitcast((bits >> 9) | jnp.uint32(0x3F800000), jnp.float32)  # [1,2)
        return u12 * 2.0 - 3.0

    h = x_ref[...].astype(jnp.float32)
    for l in range(n_layers):
        w_ref = wb_refs[2 * l]
        b_ref = wb_refs[2 * l + 1]

        if noise_on:
            # Per-layer seed from SMEM, decorrelated across batch tiles.
            pltpu.prng_seed(seed_ref[l], pl.program_id(0))

        a = h.astype(jnp.bfloat16) if use_bf16 else h
        y = jnp.dot(a, w_ref[...], preferred_element_type=jnp.float32)
        y = y + b_ref[...]

        if noise_on:
            y = y + uniform_pm1(y.shape) * noise_scale      # noise_inner
        y = jnp.maximum(y, 0.0)                              # ReLU
        if noise_on:
            y = y + uniform_pm1(y.shape) * noise_scale      # noise_outer

        if residual_flags[l]:                                # in_features == out_features
            y = y + h
        h = y

    o_ref[...] = h.astype(o_ref.dtype)


def simple_resnet_forward(x, params, *, noise_scale=0.0, base_seed=0,
                          block_m=512, use_bf16_matmul=False):
    """Fused forward pass: one pallas_call for the whole network."""
    batch, d_in = x.shape
    n_layers = len(params)

    # Layer dims and lane padding (last layer's 10-wide output -> 128 lanes).
    dims = [d_in] + [w_t.shape[1] for w_t, _ in params]           # [784,128,128,10]
    residual_flags = tuple(dims[l] == dims[l + 1] for l in range(n_layers))
    pad_out = [_round_up(d, _LANE) for d in dims[1:]]             # [128,128,128]
    pad_in = [d_in] + pad_out[:-1]

    w_dtype = jnp.bfloat16 if use_bf16_matmul else jnp.float32
    flat_wb = []
    for l, (w_t, b_row) in enumerate(params):
        w_p = jnp.pad(w_t.astype(w_dtype),
                      ((0, pad_in[l] - w_t.shape[0]), (0, pad_out[l] - w_t.shape[1])))
        b_p = jnp.pad(b_row, ((0, 0), (0, pad_out[l] - b_row.shape[1])))
        flat_wb += [w_p, b_p]

    # Batch tiling: sublane multiple of 8; grid over batch tiles for large M.
    bm = min(block_m, max(_round_up(batch, 8), 8))
    batch_p = _round_up(batch, bm)
    x_p = x if batch_p == batch else jnp.pad(x, ((0, batch_p - batch), (0, 0)))

    # One seed per layer, passed once via scalar prefetch (SMEM).
    seeds = jnp.asarray([base_seed + l for l in range(n_layers)], dtype=jnp.int32)

    kernel = functools.partial(
        _fused_resnet_kernel,
        noise_scale=float(noise_scale),
        use_bf16=bool(use_bf16_matmul),
        residual_flags=residual_flags)

    in_specs = [pl.BlockSpec((bm, d_in), lambda i, seeds_ref: (i, 0))]
    for l in range(n_layers):
        in_specs.append(pl.BlockSpec((pad_in[l], pad_out[l]), lambda i, seeds_ref: (0, 0)))
        in_specs.append(pl.BlockSpec((1, pad_out[l]), lambda i, seeds_ref: (0, 0)))
    out_spec = pl.BlockSpec((bm, pad_out[-1]), lambda i, seeds_ref: (i, 0))

    flops = 2 * batch_p * sum(dims[l] * dims[l + 1] for l in range(n_layers))
    bytes_accessed = (int(x_p.size) * x_p.dtype.itemsize
                      + batch_p * pad_out[-1] * 4
                      + sum(int(a.size) * a.dtype.itemsize for a in flat_wb))

    out_p = pl.pallas_call(
        kernel,
        out_shape=jax.ShapeDtypeStruct((batch_p, pad_out[-1]), jnp.float32),
        grid_spec=pltpu.PrefetchScalarGridSpec(
            num_scalar_prefetch=1,
            grid=(batch_p // bm,),
            in_specs=in_specs,
            out_specs=out_spec),
        compiler_params=pltpu.CompilerParams(
            dimension_semantics=("parallel",),
            vmem_limit_bytes=32 * 1024 * 1024),
        cost_estimate=pl.CostEstimate(flops=flops, transcendentals=0,
                                      bytes_accessed=bytes_accessed),
    )(seeds, x_p, *flat_wb)

    return out_p[:batch, :dims[-1]]


def init_params(key, layer_sizes):
    """Deterministic nn.Linear-style init: U(-1/sqrt(fan_in), 1/sqrt(fan_in))."""
    params = []
    for i in range(len(layer_sizes) - 1):
        d_in, d_out = layer_sizes[i], layer_sizes[i + 1]
        key, kw, kb = jax.random.split(key, 3)
        bound = 1.0 / (d_in ** 0.5)
        w = jax.random.uniform(kw, (d_out, d_in), jnp.float32, -bound, bound)
        b = jax.random.uniform(kb, (d_out,), jnp.float32, -bound, bound)
        # Pre-transpose weight to [in, out]; bias to [1, out] (glue, not hot path).
        params.append((jnp.asarray(w.T), b.reshape(1, d_out)))
    return params


def reference_forward(x, params, *, use_bf16_matmul=False):
    """Pure-JAX/XLA reference for the noise-free path (exact for noise_scale=0)."""
    # TODO(synk): torch.rand_like's RNG stream cannot be reproduced; with
    # noise_scale > 0 the kernel uses the TPU hardware PRNG instead.
    h = x
    for w_t, b_row in params:
        a = h.astype(jnp.bfloat16) if use_bf16_matmul else h
        w = w_t.astype(jnp.bfloat16) if use_bf16_matmul else w_t
        y = jnp.dot(a, w, preferred_element_type=jnp.float32) + b_row
        y = jnp.maximum(y, 0.0)
        if y.shape == h.shape:
            y = y + h
        h = y
    return h


if __name__ == "__main__":
    key = jax.random.PRNGKey(0)
    kx, kp = jax.random.split(key)

    batch = 8
    x = jax.random.normal(kx, (batch, LAYER_SIZES[0]), jnp.float32)
    params = init_params(kp, LAYER_SIZES)

    # Module default: noise_scale=0.0 (noise path statically elided), f32 matmul.
    out = simple_resnet_forward(x, params, noise_scale=0.0, base_seed=1234)
    out = jax.block_until_ready(out)
    ref = reference_forward(x, params)
    assert out.shape == (batch, LAYER_SIZES[-1])
    assert jnp.allclose(out, ref, atol=1e-4, rtol=1e-4), "mismatch vs reference (f32)"

    # bf16-input MXU fast path (v6e/v7x); checked against a matching bf16 reference.
    out_bf16 = simple_resnet_forward(x, params, noise_scale=0.0, base_seed=1234,
                                     use_bf16_matmul=True)
    out_bf16 = jax.block_until_ready(out_bf16)
    ref_bf16 = reference_forward(x, params, use_bf16_matmul=True)
    assert out_bf16.shape == (batch, LAYER_SIZES[-1])
    assert jnp.allclose(out_bf16, ref_bf16, atol=2e-2, rtol=2e-2), "mismatch vs reference (bf16)"

    print("KERNEL_OK")
</pallas_src>

<mosaic_0001>
module attributes {stable_mosaic.version = 11 : i64} {
  func.func @_fused_resnet_kernel(%arg0: i32, %arg1: memref<3xi32, #tpu.memory_space<smem>>, %arg2: memref<8x784xf32, #tpu.memory_space<vmem>>, %arg3: memref<784x128xf32, #tpu.memory_space<vmem>>, %arg4: memref<1x128xf32, #tpu.memory_space<vmem>>, %arg5: memref<128x128xf32, #tpu.memory_space<vmem>>, %arg6: memref<1x128xf32, #tpu.memory_space<vmem>>, %arg7: memref<128x128xf32, #tpu.memory_space<vmem>>, %arg8: memref<1x128xf32, #tpu.memory_space<vmem>>, %arg9: memref<8x128xf32, #tpu.memory_space<vmem>>) attributes {dimension_semantics = [#tpu.dimension_semantics<parallel>], iteration_bounds = array<i64: 1>, scalar_prefetch = 1 : i64, scratch_operands = 0 : i64, tpu.core_type = #tpu.core_type<tc>, window_params = [{transform_indices = @transform_0, window_bounds = array<i64: 8, 784>}, {pipeline_mode = #tpu.pipeline_mode<synchronous>, transform_indices = @transform_1, window_bounds = array<i64: 784, 128>}, {pipeline_mode = #tpu.pipeline_mode<synchronous>, transform_indices = @transform_2, window_bounds = array<i64: 1, 128>}, {pipeline_mode = #tpu.pipeline_mode<synchronous>, transform_indices = @transform_3, window_bounds = array<i64: 128, 128>}, {pipeline_mode = #tpu.pipeline_mode<synchronous>, transform_indices = @transform_4, window_bounds = array<i64: 1, 128>}, {pipeline_mode = #tpu.pipeline_mode<synchronous>, transform_indices = @transform_5, window_bounds = array<i64: 128, 128>}, {pipeline_mode = #tpu.pipeline_mode<synchronous>, transform_indices = @transform_6, window_bounds = array<i64: 1, 128>}, {transform_indices = @transform_7, window_bounds = array<i64: 8, 128>}]} {
    %c0 = arith.constant 0 : index
    %c0_0 = arith.constant 0 : index
    %0 = vector.load %arg2[%c0, %c0_0] : memref<8x784xf32, #tpu.memory_space<vmem>>, vector<8x784xf32>
    %c0_1 = arith.constant 0 : index
    %c0_2 = arith.constant 0 : index
    %1 = vector.load %arg3[%c0_1, %c0_2] : memref<784x128xf32, #tpu.memory_space<vmem>>, vector<784x128xf32>
    %cst = arith.constant dense<0.000000e+00> : vector<8x128xf32>
    %2 = tpu.matmul %0, %1, %cst {dimension_numbers = #tpu.dot_dimension_numbers<[1], [0], [0], [1], [0, 0, 1, 1], [], []>} : vector<8x784xf32>, vector<784x128xf32>, vector<8x128xf32> -> vector<8x128xf32>
    %c0_3 = arith.constant 0 : index
    %c0_4 = arith.constant 0 : index
    %3 = vector.load %arg4[%c0_3, %c0_4] : memref<1x128xf32, #tpu.memory_space<vmem>>, vector<1x128xf32>
    %4 = vector.broadcast %3 : vector<1x128xf32> to vector<8x128xf32>
    %5 = arith.addf %2, %4 : vector<8x128xf32>
    %cst_5 = arith.constant 0.000000e+00 : f32
    %6 = vector.broadcast %cst_5 : f32 to vector<8x128xf32>
    %7 = arith.maximumf %5, %6 : vector<8x128xf32>
    %c0_6 = arith.constant 0 : index
    %c0_7 = arith.constant 0 : index
    %8 = vector.load %arg5[%c0_6, %c0_7] : memref<128x128xf32, #tpu.memory_space<vmem>>, vector<128x128xf32>
    %cst_8 = arith.constant dense<0.000000e+00> : vector<8x128xf32>
    %9 = tpu.matmul %7, %8, %cst_8 {dimension_numbers = #tpu.dot_dimension_numbers<[1], [0], [0], [1], [0, 0, 1, 1], [], []>} : vector<8x128xf32>, vector<128x128xf32>, vector<8x128xf32> -> vector<8x128xf32>
    %c0_9 = arith.constant 0 : index
    %c0_10 = arith.constant 0 : index
    %10 = vector.load %arg6[%c0_9, %c0_10] : memref<1x128xf32, #tpu.memory_space<vmem>>, vector<1x128xf32>
    %11 = vector.broadcast %10 : vector<1x128xf32> to vector<8x128xf32>
    %12 = arith.addf %9, %11 : vector<8x128xf32>
    %cst_11 = arith.constant 0.000000e+00 : f32
    %13 = vector.broadcast %cst_11 : f32 to vector<8x128xf32>
    %14 = arith.maximumf %12, %13 : vector<8x128xf32>
    %15 = arith.addf %14, %7 : vector<8x128xf32>
    %c0_12 = arith.constant 0 : index
    %c0_13 = arith.constant 0 : index
    %16 = vector.load %arg7[%c0_12, %c0_13] : memref<128x128xf32, #tpu.memory_space<vmem>>, vector<128x128xf32>
    %cst_14 = arith.constant dense<0.000000e+00> : vector<8x128xf32>
    %17 = tpu.matmul %15, %16, %cst_14 {dimension_numbers = #tpu.dot_dimension_numbers<[1], [0], [0], [1], [0, 0, 1, 1], [], []>} : vector<8x128xf32>, vector<128x128xf32>, vector<8x128xf32> -> vector<8x128xf32>
    %c0_15 = arith.constant 0 : index
    %c0_16 = arith.constant 0 : index
    %18 = vector.load %arg8[%c0_15, %c0_16] : memref<1x128xf32, #tpu.memory_space<vmem>>, vector<1x128xf32>
    %19 = vector.broadcast %18 : vector<1x128xf32> to vector<8x128xf32>
    %20 = arith.addf %17, %19 : vector<8x128xf32>
    %cst_17 = arith.constant 0.000000e+00 : f32
    %21 = vector.broadcast %cst_17 : f32 to vector<8x128xf32>
    %22 = arith.maximumf %20, %21 : vector<8x128xf32>
    %c0_18 = arith.constant 0 : index
    %c0_19 = arith.constant 0 : index
    %23 = vector.load %arg9[%c0_18, %c0_19] : memref<8x128xf32, #tpu.memory_space<vmem>>, vector<8x128xf32>
    tpu.vector_store %arg9[%c0_18, %c0_19], %22 {strides = array<i32>} : memref<8x128xf32, #tpu.memory_space<vmem>>, vector<8x128xf32>,
    return
  }
  func.func @transform_0(%arg0: i32, %arg1: memref<3xi32, #tpu.memory_space<smem>>) -> (i32, i32) {
    %c0_i32 = arith.constant 0 : i32
    %c0_i32_0 = arith.constant 0 : i32
    return %arg0, %c0_i32 : i32, i32
  }
  func.func @transform_1(%arg0: i32, %arg1: memref<3xi32, #tpu.memory_space<smem>>) -> (i32, i32) {
    %c0_i32 = arith.constant 0 : i32
    %c0_i32_0 = arith.constant 0 : i32
    %c0_i32_1 = arith.constant 0 : i32
    return %c0_i32, %c0_i32_0 : i32, i32
  }
  func.func @transform_2(%arg0: i32, %arg1: memref<3xi32, #tpu.memory_space<smem>>) -> (i32, i32) {
    %c0_i32 = arith.constant 0 : i32
    %c0_i32_0 = arith.constant 0 : i32
    %c0_i32_1 = arith.constant 0 : i32
    return %c0_i32, %c0_i32_0 : i32, i32
  }
  func.func @transform_3(%arg0: i32, %arg1: memref<3xi32, #tpu.memory_space<smem>>) -> (i32, i32) {
    %c0_i32 = arith.constant 0 : i32
    %c0_i32_0 = arith.constant 0 : i32
    %c0_i32_1 = arith.constant 0 : i32
    return %c0_i32, %c0_i32_0 : i32, i32
  }
  func.func @transform_4(%arg0: i32, %arg1: memref<3xi32, #tpu.memory_space<smem>>) -> (i32, i32) {
    %c0_i32 = arith.constant 0 : i32
    %c0_i32_0 = arith.constant 0 : i32
    %c0_i32_1 = arith.constant 0 : i32
    return %c0_i32, %c0_i32_0 : i32, i32
  }
  func.func @transform_5(%arg0: i32, %arg1: memref<3xi32, #tpu.memory_space<smem>>) -> (i32, i32) {
    %c0_i32 = arith.constant 0 : i32
    %c0_i32_0 = arith.constant 0 : i32
    %c0_i32_1 = arith.constant 0 : i32
    return %c0_i32, %c0_i32_0 : i32, i32
  }
  func.func @transform_6(%arg0: i32, %arg1: memref<3xi32, #tpu.memory_space<smem>>) -> (i32, i32) {
    %c0_i32 = arith.constant 0 : i32
    %c0_i32_0 = arith.constant 0 : i32
    %c0_i32_1 = arith.constant 0 : i32
    return %c0_i32, %c0_i32_0 : i32, i32
  }
  func.func @transform_7(%arg0: i32, %arg1: memref<3xi32, #tpu.memory_space<smem>>) -> (i32, i32) {
    %c0_i32 = arith.constant 0 : i32
    %c0_i32_0 = arith.constant 0 : i32
    return %arg0, %c0_i32 : i32, i32
  }
}

</mosaic_0001>

<bundles_post_ra>
// kernel: tpu_custom_call.1
= control target key start
LH: loop header
LB: loop body
LE: loop exit
PB: predicated region body
PF: predicated region fallthrough
CT: control target
= control target key end

     0   :  { %s1040_s27 = smov [#allocation3]   ;;  %s1171_s0 = inlined_call_operand.hbm [shape: s32[3], index: 0, kind: input, shape index: {}]   ;;  %s1172_s1 = inlined_call_operand.hbm [shape: f32[8,784], index: 1, kind: input, shape index: {}]   ;;  %s1173_s2 = inlined_call_operand.hbm [shape: f32[784,128], index: 2, kind: input, shape index: {}]   ;;  %s1174_s3 = inlined_call_operand.vmem [shape: f32[1,128], index: 3, kind: input, shape index: {}]   ;;  %s1175_s4 = inlined_call_operand.hbm [shape: f32[128,128], index: 4, kind: input, shape index: {}]   ;;  %s1176_s5 = inlined_call_operand.vmem [shape: f32[1,128], index: 5, kind: input, shape index: {}]   ;;  %s1177_s6 = inlined_call_operand.hbm [shape: f32[128,128], index: 6, kind: input, shape index: {}]   ;;  %s1178_s7 = inlined_call_operand.vmem [shape: f32[1,128], index: 7, kind: input, shape index: {}]   ;;  %s1179_s8 = inlined_call_operand.hbm [shape: f32[8,128], index: 8, kind: output, shape index: {}]  }
   0x1   :  { %14 = dma.hbm_to_smem %s1171_s0, 16, %s1040_s27, [#allocation2] }
   0x2   :  { %1030 = dma.done.wait [#allocation2], 16 }
   0x3   :  { %1031 = vsyncadd [#allocation2], 4294967280 }
   0x4   :  { %16 = sfence }
   0x5   :  { %17 = vsyncpa [#allocation5], 0 }
   0x6   :  { %18 = vsyncpa [#allocation8], 0 }
   0x7   :  { %19 = vsyncpa [#allocation11], 0 }
   0x8   :  { %20 = vsyncpa [#allocation6], 0  ;;  %s1041_s30 = smov [#allocation7]  }
   0x9   :  { %s36_s9 = sshll.u32 %s1041_s30, 4  ;;  %s37_s9 = int_to_ptr.vmem [resolvable:$true] %s36_s9 }
   0xa   :  { %s938_s10 = scalar_lea.vmem %s37_s9, 12544  ;;  %p943_p1 = scmp.lt.s32.totalorder %s37_s9, %s37_s9 }
   0xb   :  { %p939_p0 = scmp.ne.s32.totalorder %s37_s9, %s938_s10  ;;  %p944_p2 = scmp.lt.s32.totalorder %s938_s10, %s938_s10 }
   0xd   :  { %p945_p3 = por %p944_p2, %p943_p1 }
   0xf   :  { %p946_p4 = pnand %p945_p3, %p939_p0 }
  0x11   :  { %949 = shalt.err (!%p946_p4)
}
  0x12   :  { %s1042_s11 = smov 128   ;;  %s1043_s12 = smov 8  }
  0x13   :  { %42 = dma.hbm_to_vmem [thread:$0]  %s1173_s2, 12544, %s37_s9, [#allocation8], %s1042_s11, %s1042_s11, %s1043_s12  }
  0x14   :  { %s1044_s14 = smov [#allocation4]   ;;  %s1045_s16 = smov [#allocation9]  }
  0x15   :  { %s27_s15 = sshll.u32 %s1044_s14, 4  ;;  %s50_s17 = sshll.u32 %s1045_s16, 4  ;;  %s28_s15 = int_to_ptr.vmem [resolvable:$true] %s27_s15  ;;  %s51_s17 = int_to_ptr.vmem [resolvable:$true] %s50_s17 }
  0x16   :  { %s958_s18 = scalar_lea.vmem %s28_s15, 896  ;;  %p963_p6 = scmp.lt.s32.totalorder %s28_s15, %s28_s15 }
  0x17   :  { %p959_p5 = scmp.ne.s32.totalorder %s28_s15, %s958_s18  ;;  %p964_p7 = scmp.lt.s32.totalorder %s958_s18, %s958_s18 }
  0x19   :  { %p965_p8 = por %p964_p7, %p963_p6 }
  0x1b   :  { %p966_p9 = pnand %p965_p8, %p959_p5 }
  0x1d   :  { %969 = shalt.err (!%p966_p9)
}
  0x1e   :  { %30 = dma.hbm_to_vmem [thread:$0]  %s1172_s1, 896, %s28_s15, [#allocation5]  }
  0x1f   :  { %s978_s21 = scalar_lea.vmem %s51_s17, 2048  ;;  %p983_p11 = scmp.lt.s32.totalorder %s51_s17, %s51_s17 }
  0x20   :  { %p979_p10 = scmp.ne.s32.totalorder %s51_s17, %s978_s21  ;;  %p984_p12 = scmp.lt.s32.totalorder %s978_s21, %s978_s21 }
  0x22   :  { %p985_p13 = por %p984_p12, %p983_p11 }
  0x24   :  { %p986_p0 = pnand %p985_p13, %p979_p10 }
  0x26   :  { %989 = shalt.err (!%p986_p0)
}
  0x27   :  { %56 = dma.hbm_to_vmem [thread:$0]  %s1175_s4, 2048, %s51_s17, [#allocation8], %s1042_s11, %s1042_s11, %s1043_s12  }
  0x28   :  { %s1046_s23 = smov [#allocation10]  }
  0x29   :  { %s64_s24 = sshll.u32 %s1046_s23, 4  ;;  %s65_s24 = int_to_ptr.vmem [resolvable:$true] %s64_s24 }
  0x2a   :  { %s998_s25 = scalar_lea.vmem %s65_s24, 2048  ;;  %p1003_p2 = scmp.lt.s32.totalorder %s65_s24, %s65_s24 }
  0x2b   :  { %p999_p1 = scmp.ne.s32.totalorder %s65_s24, %s998_s25  ;;  %p1004_p3 = scmp.lt.s32.totalorder %s998_s25, %s998_s25 }
  0x2d   :  { %p1005_p4 = por %p1004_p3, %p1003_p2 }
  0x2f   :  { %p1006_p5 = pnand %p1005_p4, %p999_p1 }
  0x31   :  { %1009 = shalt.err (!%p1006_p5)
}
  0x32   :  { %70 = dma.hbm_to_vmem [thread:$0]  %s1177_s6, 2048, %s65_s24, [#allocation11], %s1042_s11, %s1042_s11, %s1043_s12  }
  0x33   :  { %1032 = dma.done.wait [#allocation5], 896  }
  0x34   :  { %1033 = vsyncadd [#allocation5], 4294966400 }
  0x35   :  { %1034 = dma.done.wait [#allocation8], 14592  }
  0x36   :  { %1035 = vsyncadd [#allocation8], 4294952704 }
  0x37   :  { %1036 = dma.done.wait [#allocation11], 2048  }
  0x38   :  { %1037 = vsyncadd [#allocation11], 4294965248  ;;  %v123_v0 = vld [vmem:[#allocation7 + $0xf8] sm:$0xff]  ;;  %v122_v2 = vld [vmem:[#allocation7 + $0xf0] sm:$0xff]  ;;  %vm197_vm0 = vcmask 130048   ;;  %vm1048_vm1 = vmmov 0  }
  0x39   :  { %v107_v1 = vld [vmem:[#allocation7 + $0x78] sm:$0xff]  ;;  %693 = vmatprep.subr.mxu0 %v123_v0  ;;  %v106_v4 = vld [vmem:[#allocation7 + $0x70] sm:$0xff]  ;;  %v121_v6 = vld [vmem:[#allocation7 + $0xe8] sm:$0xff]  ;;  %s1049_s30 = smov [#allocation12]  }
  0x3a   :  { %v155_v3 = vld [vmem:[#allocation7 + $0x1f8] sm:$0xff]  ;;  %694 = vmatpush3.msra.mxu0 %v107_v1  ;;  %v154_v7 = vld [vmem:[#allocation7 + $0x1f0] sm:$0xff]  ;;  %v105_v8 = vld [vmem:[#allocation7 + $0x68] sm:$0xff]  ;;  %s678_s9 = sshll.u32 %s1049_s30, 4  ;;  %s679_s9 = int_to_ptr.vmem [resolvable:$true] %s678_s9 }
  0x3b   :  { %v139_v5 = vld [vmem:[#allocation7 + $0x178] sm:$0xff]  ;;  %728 = vmatprep.subr.mxu1 %v155_v3  ;;  %695 = vmatprep.subr.mxu0 %v122_v2  ;;  %v138_v9 = vld [vmem:[#allocation7 + $0x170] sm:$0xff]  ;;  %v153_v10 = vld [vmem:[#allocation7 + $0x1e8] sm:$0xff]  ;;  %s1010_s10 = scalar_lea.vmem %s679_s9, 128  ;;  %p1015_p7 = scmp.lt.s32.totalorder %s679_s9, %s679_s9 }
  0x3c   :  { %729 = vmatpush3.msra.mxu1 %v139_v5  ;;  %696 = vmatpush3.msra.mxu0 %v106_v4  ;;  %v120_v11 = vld [vmem:[#allocation7 + $0xe0] sm:$0xff]  ;;  %v137_v12 = vld [vmem:[#allocation7 + $0x168] sm:$0xff]  ;;  %v119_v15 = vld [vmem:[#allocation7 + $0xd8] sm:$0xff]  ;;  %p1011_p6 = scmp.ne.s32.totalorder %s679_s9, %s1010_s10  ;;  %p1016_p8 = scmp.lt.s32.totalorder %s1010_s10, %s1010_s10 }
  0x3d   :  { %730 = vmatprep.subr.mxu1 %v154_v7  ;;  %697 = vmatprep.subr.mxu0 %v121_v6  ;;  %v104_v13 = vld [vmem:[#allocation7 + $0x60] sm:$0xff]  ;;  %v103_v17 = vld [vmem:[#allocation7 + $0x58] sm:$0xff]  ;;  %v118_v19 = vld [vmem:[#allocation7 + $0xd0] sm:$0xff] }
  0x3e   :  { %731 = vmatpush3.msra.mxu1 %v138_v9  ;;  %v152_v14 = vld [vmem:[#allocation7 + $0x1e0] sm:$0xff]  ;;  %698 = vmatpush3.msra.mxu0 %v105_v8  ;;  %v151_v18 = vld [vmem:[#allocation7 + $0x1d8] sm:$0xff]  ;;  %v102_v21 = vld [vmem:[#allocation7 + $0x50] sm:$0xff]  ;;  %p1017_p9 = por %p1016_p8, %p1015_p7 }
  0x3f   :  { %732 = vmatprep.subr.mxu1 %v153_v10  ;;  %v136_v16 = vld [vmem:[#allocation7 + $0x160] sm:$0xff]  ;;  %699 = vmatprep.subr.mxu0 %v120_v11  ;;  %v135_v20 = vld [vmem:[#allocation7 + $0x158] sm:$0xff]  ;;  %v150_v22 = vld [vmem:[#allocation7 + $0x1d0] sm:$0xff] }
  0x40   :  { %733 = vmatpush3.msra.mxu1 %v137_v12  ;;  %700 = vmatpush3.msra.mxu0 %v104_v13  ;;  %v117_v23 = vld [vmem:[#allocation7 + $0xc8] sm:$0xff]  ;;  %v134_v24 = vld [vmem:[#allocation7 + $0x150] sm:$0xff]  ;;  %v116_v27 = vld [vmem:[#allocation7 + $0xc0] sm:$0xff]  ;;  %p1018_p10 = pnand %p1017_p9, %p1011_p6 }
  0x41   :  { %734 = vmatprep.subr.mxu1 %v152_v14  ;;  %701 = vmatprep.subr.mxu0 %v119_v15  ;;  %v101_v25 = vld [vmem:[#allocation7 + $0x48] sm:$0xff]  ;;  %v100_v29 = vld [vmem:[#allocation7 + $0x40] sm:$0xff]  ;;  %v115_v31 = vld [vmem:[#allocation7 + $0xb8] sm:$0xff]  ;;  %v1047_v14 = vmov 0.0  }
  0x42   :  { %735 = vmatpush3.msra.mxu1 %v136_v16  ;;  %702 = vmatpush3.msra.mxu0 %v103_v17  ;;  %v149_v26 = vld [vmem:[#allocation7 + $0x1c8] sm:$0xff]  ;;  %v148_v30 = vld [vmem:[#allocation7 + $0x1c0] sm:$0xff]  ;;  %v99_v33 = vld [vmem:[#allocation7 + $0x38] sm:$0xff] }
  0x43   :  { %736 = vmatprep.subr.mxu1 %v151_v18  ;;  %703 = vmatprep.subr.mxu0 %v118_v19  ;;  %v133_v28 = vld [vmem:[#allocation7 + $0x148] sm:$0xff]  ;;  %v132_v32 = vld [vmem:[#allocation7 + $0x140] sm:$0xff]  ;;  %v147_v34 = vld [vmem:[#allocation7 + $0x1b8] sm:$0xff] }
  0x44   :  { %737 = vmatpush3.msra.mxu1 %v135_v20  ;;  %704 = vmatpush3.msra.mxu0 %v102_v21  ;;  %v114_v35 = vld [vmem:[#allocation7 + $0xb0] sm:$0xff]  ;;  %v131_v36 = vld [vmem:[#allocation7 + $0x138] sm:$0xff]  ;;  %v113_v39 = vld [vmem:[#allocation7 + $0xa8] sm:$0xff] }
  0x45   :  { %738 = vmatprep.subr.mxu1 %v150_v22  ;;  %705 = vmatprep.subr.mxu0 %v117_v23  ;;  %v98_v37 = vld [vmem:[#allocation7 + $0x30] sm:$0xff]  ;;  %v97_v41 = vld [vmem:[#allocation7 + $0x28] sm:$0xff]  ;;  %v112_v43 = vld [vmem:[#allocation7 + $0xa0] sm:$0xff] }
  0x46   :  { %739 = vmatpush3.msra.mxu1 %v134_v24  ;;  %706 = vmatpush3.msra.mxu0 %v101_v25  ;;  %v146_v38 = vld [vmem:[#allocation7 + $0x1b0] sm:$0xff]  ;;  %v145_v42 = vld [vmem:[#allocation7 + $0x1a8] sm:$0xff]  ;;  %v96_v45 = vld [vmem:[#allocation7 + $0x20] sm:$0xff] }
  0x47   :  { %740 = vmatprep.subr.mxu1 %v149_v26  ;;  %707 = vmatprep.subr.mxu0 %v116_v27  ;;  %v130_v40 = vld [vmem:[#allocation7 + $0x130] sm:$0xff]  ;;  %v129_v44 = vld [vmem:[#allocation7 + $0x128] sm:$0xff]  ;;  %v144_v46 = vld [vmem:[#allocation7 + $0x1a0] sm:$0xff] }
  0x48   :  { %741 = vmatpush3.msra.mxu1 %v133_v28  ;;  %708 = vmatpush3.msra.mxu0 %v100_v29  ;;  %v111_v47 = vld [vmem:[#allocation7 + $0x98] sm:$0xff]  ;;  %v128_v48 = vld [vmem:[#allocation7 + $0x120] sm:$0xff]  ;;  %v110_v51 = vld [vmem:[#allocation7 + $0x90] sm:$0xff] }
  0x49   :  { %742 = vmatprep.subr.mxu1 %v148_v30  ;;  %709 = vmatprep.subr.mxu0 %v115_v31  ;;  %v95_v49 = vld [vmem:[#allocation7 + $0x18] sm:$0xff]  ;;  %v94_v53 = vld [vmem:[#allocation7 + $0x10] sm:$0xff]  ;;  %v109_v55 = vld [vmem:[#allocation7 + $0x88] sm:$0xff] }
  0x4a   :  { %743 = vmatpush3.msra.mxu1 %v132_v32  ;;  %710 = vmatpush3.msra.mxu0 %v99_v33  ;;  %v143_v50 = vld [vmem:[#allocation7 + $0x198] sm:$0xff]  ;;  %v142_v54 = vld [vmem:[#allocation7 + $0x190] sm:$0xff]  ;;  %v93_v57 = vld [vmem:[#allocation7 + $0x8] sm:$0xff] }
  0x4b   :  { %744 = vmatprep.subr.mxu1 %v147_v34  ;;  %711 = vmatprep.subr.mxu0 %v114_v35  ;;  %v127_v52 = vld [vmem:[#allocation7 + $0x118] sm:$0xff]  ;;  %v126_v56 = vld [vmem:[#allocation7 + $0x110] sm:$0xff]  ;;  %v141_v58 = vld [vmem:[#allocation7 + $0x188] sm:$0xff] }
  0x4c   :  { %745 = vmatpush3.msra.mxu1 %v131_v36  ;;  %712 = vmatpush3.msra.mxu0 %v98_v37  ;;  %v108_v59 = vld [vmem:[#allocation7 + $0x80] sm:$0xff]  ;;  %v86_v60 = vld [vmem:[#allocation4 + $0x8] sm:$0xff]  ;;  %v125_v62 = vld [vmem:[#allocation7 + $0x108] sm:$0xff] }
  0x4d   :  { %746 = vmatprep.subr.mxu1 %v146_v38  ;;  %713 = vmatprep.subr.mxu0 %v113_v39  ;;  %v92_v61 = vld [vmem:[#allocation7] sm:$0xff]  ;;  %v85_v63 = vld [vmem:[#allocation4] sm:$0xff]  ;;  %v187_v1 = vld [vmem:[#allocation7 + $0x2f8] sm:$0xff] }
  0x4e   :  { %747 = vmatpush3.msra.mxu1 %v130_v40  ;;  %714 = vmatpush3.msra.mxu0 %v97_v41  ;;  %v140_v0 = vld [vmem:[#allocation7 + $0x180] sm:$0xff]  ;;  %v171_v4 = vld [vmem:[#allocation7 + $0x278] sm:$0xff]  ;;  %v186_v6 = vld [vmem:[#allocation7 + $0x2f0] sm:$0xff] }
  0x4f   :  { %748 = vmatprep.subr.mxu1 %v145_v42  ;;  %715 = vmatprep.subr.mxu0 %v112_v43  ;;  %v124_v2 = vld [vmem:[#allocation7 + $0x100] sm:$0xff]  ;;  %v87_v5 = vld [vmem:[#allocation4 + $0x10] sm:$0xff]  ;;  %v170_v7 = vld [vmem:[#allocation7 + $0x270] sm:$0xff] }
  0x50   :  { %749 = vmatpush3.msra.mxu1 %v129_v44  ;;  %716 = vmatpush3.msra.mxu0 %v96_v45  ;;  %v88_v3 = vld [vmem:[#allocation4 + $0x18] sm:$0xff]  ;;  %v90_v8 = vld [vmem:[#allocation4 + $0x28] sm:$0xff]  ;;  %v185_v9 = vld [vmem:[#allocation7 + $0x2e8] sm:$0xff] }
  0x51   :  { %750 = vmatprep.subr.mxu1 %v144_v46  ;;  %717 = vmatprep.subr.mxu0 %v111_v47  ;;  %v169_v10 = vld [vmem:[#allocation7 + $0x268] sm:$0xff]  ;;  %v184_v12 = vld [vmem:[#allocation7 + $0x2e0] sm:$0xff]  ;;  %v183_v16 = vld [vmem:[#allocation7 + $0x2d8] sm:$0xff] }
  0x52   :  { %751 = vmatpush3.msra.mxu1 %v128_v48  ;;  %718 = vmatpush3.msra.mxu0 %v95_v49  ;;  %v189_v11 = vld [vmem:[#allocation7 + $0x308] sm:$0xff]  ;;  %v168_v13 = vld [vmem:[#allocation7 + $0x260] sm:$0xff]  ;;  %v167_v17 = vld [vmem:[#allocation7 + $0x258] sm:$0xff] }
  0x53   :  { %752 = vmatprep.subr.mxu1 %v143_v50  ;;  %719 = vmatprep.subr.mxu0 %v110_v51  ;;  %v188_v15 = vld [vmem:[#allocation7 + $0x300] sm:$0xff]  ;;  %v91_v18 = vld [vmem:[#allocation4 + $0x30] sm:$0xff]  ;;  %v182_v19 = vld [vmem:[#allocation7 + $0x2d0] sm:$0xff] }
  0x54   :  { %753 = vmatpush3.msra.mxu1 %v127_v52  ;;  %720 = vmatpush3.msra.mxu0 %v94_v53  ;;  %v166_v20 = vld [vmem:[#allocation7 + $0x250] sm:$0xff]  ;;  %v181_v21 = vld [vmem:[#allocation7 + $0x2c8] sm:$0xff]  ;;  %v180_v23 = vld [vmem:[#allocation7 + $0x2c0] sm:$0xff] }
  0x55   :  { %754 = vmatprep.subr.mxu1 %v142_v54  ;;  %721 = vmatprep.subr.mxu0 %v109_v55  ;;  %v165_v22 = vld [vmem:[#allocation7 + $0x248] sm:$0xff]  ;;  %v164_v24 = vld [vmem:[#allocation7 + $0x240] sm:$0xff]  ;;  %v179_v25 = vld [vmem:[#allocation7 + $0x2b8] sm:$0xff] }
  0x56   :  { %755 = vmatpush3.msra.mxu1 %v126_v56  ;;  %722 = vmatpush3.msra.mxu0 %v93_v57  ;;  %v163_v26 = vld [vmem:[#allocation7 + $0x238] sm:$0xff]  ;;  %v178_v27 = vld [vmem:[#allocation7 + $0x2b0] sm:$0xff]  ;;  %v177_v29 = vld [vmem:[#allocation7 + $0x2a8] sm:$0xff] }
  0x57   :  { %756 = vmatprep.subr.mxu1 %v141_v58  ;;  %723 = vmatprep.subr.mxu0 %v108_v59  ;;  %v162_v28 = vld [vmem:[#allocation7 + $0x230] sm:$0xff]  ;;  %v161_v30 = vld [vmem:[#allocation7 + $0x228] sm:$0xff]  ;;  %v176_v31 = vld [vmem:[#allocation7 + $0x2a0] sm:$0xff] }
  0x58   :  { %265 = vmatprep.mubr.f32.mxu0 %v86_v60  ;;  %724 = vmatpush3.msra.mxu0 %v92_v61  ;;  %v160_v32 = vld [vmem:[#allocation7 + $0x220] sm:$0xff]  ;;  %v175_v33 = vld [vmem:[#allocation7 + $0x298] sm:$0xff]  ;;  %v174_v35 = vld [vmem:[#allocation7 + $0x290] sm:$0xff] }
  0x59   :  { %757 = vmatpush3.msra.mxu1 %v125_v62  ;;  %266 = vmatmul.mubr.f32.vlgmr.msra.gmra.mxu0 %v85_v63  ;;  %v159_v34 = vld [vmem:[#allocation7 + $0x218] sm:$0xff]  ;;  %v158_v36 = vld [vmem:[#allocation7 + $0x210] sm:$0xff]  ;;  %v173_v37 = vld [vmem:[#allocation7 + $0x288] sm:$0xff] }
  0x5a   :  { %758 = vmatprep.subr.mxu1 %v140_v0  ;;  %763 = vmatprep.subr.mxu0 %v187_v1  ;;  %v157_v38 = vld [vmem:[#allocation7 + $0x208] sm:$0xff]  ;;  %v172_v39 = vld [vmem:[#allocation7 + $0x280] sm:$0xff]  ;;  %v495_v44 = vld [vmem:[#allocation9 + $0x68] sm:$0xff] }
  0x5b   :  { %759 = vmatpush3.msra.mxu1 %v124_v2  ;;  %335 = vmatprep.mubr.f32.mxu1 %v88_v3  ;;  %v156_v40 = vld [vmem:[#allocation7 + $0x200] sm:$0xff]  ;;  %v89_v41 = vld [vmem:[#allocation4 + $0x20] sm:$0xff]  ;;  %v494_v45 = vld [vmem:[#allocation9 + $0x60] sm:$0xff] }
  0x5c   :  { %764 = vmatpush3.msra.mxu0 %v171_v4  ;;  %336 = vmatmul.mubr.f32.vlgmr.msra.gmra.mxu1 %v87_v5  ;;  %v497_v42 = vld [vmem:[#allocation9 + $0x78] sm:$0xff]  ;;  %v496_v43 = vld [vmem:[#allocation9 + $0x70] sm:$0xff]  ;;  %v491_v48 = vld [vmem:[#allocation9 + $0x48] sm:$0xff] }
  0x5d   :  { %765 = vmatprep.subr.mxu0 %v186_v6  ;;  %405 = vmatprep.mubr.f32.mxu0 %v90_v8  ;;  %v493_v46 = vld [vmem:[#allocation9 + $0x58] sm:$0xff]  ;;  %v492_v47 = vld [vmem:[#allocation9 + $0x50] sm:$0xff]  ;;  %v490_v49 = vld [vmem:[#allocation9 + $0x40] sm:$0xff] }
  0x5e   :  { %766 = vmatpush3.msra.mxu0 %v170_v7  ;;  %835 = vmatprep.subr.mxu1 %v1047_v14  ;;  %v489_v50 = vld [vmem:[#allocation9 + $0x38] sm:$0xff]  ;;  %v488_v51 = vld [vmem:[#allocation9 + $0x30] sm:$0xff]  ;;  %v487_v52 = vld [vmem:[#allocation9 + $0x28] sm:$0xff] }
  0x5f   :  { %767 = vmatprep.subr.mxu0 %v185_v9  ;;  %836 = vmatpush3.msra.mxu1 %v189_v11  ;;  %v486_v53 = vld [vmem:[#allocation9 + $0x20] sm:$0xff]  ;;  %v485_v54 = vld [vmem:[#allocation9 + $0x18] sm:$0xff]  ;;  %v484_v55 = vld [vmem:[#allocation9 + $0x10] sm:$0xff] }
  0x60   :  { %768 = vmatpush3.msra.mxu0 %v169_v10  ;;  %837 = vmatprep.subr.mxu1 %v1047_v14  ;;  %v483_v56 = vld [vmem:[#allocation9 + $0x8] sm:$0xff]  ;;  %v482_v57 = vld [vmem:[#allocation9] sm:$0xff]  ;;  %v592_v58 = vld [vmem:[#allocation10 + $0x78] sm:$0xff] }
  0x61   :  { %769 = vmatprep.subr.mxu0 %v184_v12  ;;  %838 = vmatpush3.msra.mxu1 %v188_v15  ;;  %v591_v59 = vld [vmem:[#allocation10 + $0x70] sm:$0xff]  ;;  %v590_v60 = vld [vmem:[#allocation10 + $0x68] sm:$0xff]  ;;  %v589_v61 = vld [vmem:[#allocation10 + $0x60] sm:$0xff] }
  0x62   :  { %770 = vmatpush3.msra.mxu0 %v168_v13  ;;  %839 = vmatprep.mubr.msk.f32.mxu1 %vm1048_vm1, %v1047_v14  ;;  %v588_v62 = vld [vmem:[#allocation10 + $0x58] sm:$0xff]  ;;  %v587_v63 = vld [vmem:[#allocation10 + $0x50] sm:$0xff]  ;;  %v586_v0 = vld [vmem:[#allocation10 + $0x48] sm:$0xff] }
  0x63   :  { %771 = vmatprep.subr.mxu0 %v183_v16  ;;  %840 = vmatmul.mubr.msk.f32.vlgmr.msra.gmra.mxu1 %vm197_vm0, %v91_v18  ;;  %v585_v1 = vld [vmem:[#allocation10 + $0x40] sm:$0xff]  ;;  %v584_v2 = vld [vmem:[#allocation10 + $0x38] sm:$0xff]  ;;  %v583_v3 = vld [vmem:[#allocation10 + $0x30] sm:$0xff] }
  0x64   :  { %772 = vmatpush3.msra.mxu0 %v167_v17  ;;  %842 = vmatprep.subr.mxu1 %v1047_v14  ;;  %v582_v4 = vld [vmem:[#allocation10 + $0x28] sm:$0xff]  ;;  %v581_v5 = vld [vmem:[#allocation10 + $0x20] sm:$0xff]  ;;  %v689_v13 = vld [vmem:[%s1174_s3] ss:$0 sm:$0xff] }
  0x65   :  { %773 = vmatprep.subr.mxu0 %v182_v19  ;;  %874 = vmatprep.mubr.msk.f32.mxu1 %vm1048_vm1, %v1047_v14 }
  0x66   :  { %774 = vmatpush3.msra.mxu0 %v166_v20  ;;  %843 = vmatpush3.msra.mxu1 %v497_v42 }
  0x67   :  { %775 = vmatprep.subr.mxu0 %v181_v21  ;;  %844 = vmatprep.subr.mxu1 %v1047_v14 }
  0x68   :  { %776 = vmatpush3.msra.mxu0 %v165_v22  ;;  %845 = vmatpush3.msra.mxu1 %v496_v43 }
  0x69   :  { %777 = vmatprep.subr.mxu0 %v180_v23  ;;  %846 = vmatprep.subr.mxu1 %v1047_v14 }
  0x6a   :  { %778 = vmatpush3.msra.mxu0 %v164_v24  ;;  %847 = vmatpush3.msra.mxu1 %v495_v44  ;;  %v580_v24 = vld [vmem:[#allocation10 + $0x18] sm:$0xff] }
  0x6b   :  { %779 = vmatprep.subr.mxu0 %v179_v25  ;;  %848 = vmatprep.subr.mxu1 %v1047_v14  ;;  %v579_v25 = vld [vmem:[#allocation10 + $0x10] sm:$0xff] }
  0x6c   :  { %780 = vmatpush3.msra.mxu0 %v163_v26  ;;  %849 = vmatpush3.msra.mxu1 %v494_v45  ;;  %v578_v26 = vld [vmem:[#allocation10 + $0x8] sm:$0xff] }
  0x6d   :  { %781 = vmatprep.subr.mxu0 %v178_v27  ;;  %850 = vmatprep.subr.mxu1 %v1047_v14  ;;  %v577_v27 = vld [vmem:[#allocation10] sm:$0xff] }
  0x6e   :  { %782 = vmatpush3.msra.mxu0 %v162_v28  ;;  %851 = vmatpush3.msra.mxu1 %v493_v46  ;;  %v691_v28 = vld [vmem:[%s1176_s5] ss:$0 sm:$0xff] }
  0x6f   :  { %783 = vmatprep.subr.mxu0 %v177_v29  ;;  %852 = vmatprep.subr.mxu1 %v1047_v14 }
  0x70   :  { %784 = vmatpush3.msra.mxu0 %v161_v30  ;;  %853 = vmatpush3.msra.mxu1 %v492_v47 }
  0x71   :  { %785 = vmatprep.subr.mxu0 %v176_v31  ;;  %854 = vmatprep.subr.mxu1 %v1047_v14 }
  0x72   :  { %786 = vmatpush3.msra.mxu0 %v160_v32  ;;  %855 = vmatpush3.msra.mxu1 %v491_v48 }
  0x73   :  { %787 = vmatprep.subr.mxu0 %v175_v33  ;;  %856 = vmatprep.subr.mxu1 %v1047_v14 }
  0x74   :  { %788 = vmatpush3.msra.mxu0 %v159_v34  ;;  %857 = vmatpush3.msra.mxu1 %v490_v49  ;;  %v692_v34 = vld [vmem:[%s1178_s7] ss:$0 sm:$0xff] }
  0x75   :  { %789 = vmatprep.subr.mxu0 %v174_v35  ;;  %858 = vmatprep.subr.mxu1 %v1047_v14 }
  0x76   :  { %790 = vmatpush3.msra.mxu0 %v158_v36  ;;  %859 = vmatpush3.msra.mxu1 %v489_v50 }
  0x77   :  { %791 = vmatprep.subr.mxu0 %v173_v37  ;;  %860 = vmatprep.subr.mxu1 %v1047_v14 }
  0x78   :  { %792 = vmatpush3.msra.mxu0 %v157_v38  ;;  %861 = vmatpush3.msra.mxu1 %v488_v51 }
  0x79   :  { %793 = vmatprep.subr.mxu0 %v172_v39  ;;  %862 = vmatprep.subr.mxu1 %v1047_v14 }
  0x7a   :  { %794 = vmatpush3.msra.mxu0 %v156_v40  ;;  %863 = vmatpush3.msra.mxu1 %v487_v52 }
  0x7b   :  { %406 = vmatmul.mubr.f32.vlgmr.msra.gmra.mxu0 %v89_v41  ;;  %877 = vmatprep.subr.mxu0 %v1047_v14 }
  0x7c   :  { %909 = vmatprep.mubr.msk.f32.mxu0 %vm1048_vm1, %v1047_v14  ;;  %864 = vmatprep.subr.mxu1 %v1047_v14 }
  0x7d   :  { %865 = vmatpush3.msra.mxu1 %v486_v53  ;;  %878 = vmatpush3.msra.mxu0 %v592_v58 }
  0x7e   :  { %866 = vmatprep.subr.mxu1 %v1047_v14  ;;  %879 = vmatprep.subr.mxu0 %v1047_v14 }
  0x7f   :  { %867 = vmatpush3.msra.mxu1 %v485_v54  ;;  %880 = vmatpush3.msra.mxu0 %v591_v59 }
  0x80   :  { %868 = vmatprep.subr.mxu1 %v1047_v14  ;;  %881 = vmatprep.subr.mxu0 %v1047_v14 }
  0x81   :  { %869 = vmatpush3.msra.mxu1 %v484_v55  ;;  %882 = vmatpush3.msra.mxu0 %v590_v60 }
  0x82   :  { %870 = vmatprep.subr.mxu1 %v1047_v14  ;;  %883 = vmatprep.subr.mxu0 %v1047_v14 }
  0x83   :  { %871 = vmatpush3.msra.mxu1 %v483_v56  ;;  %884 = vmatpush3.msra.mxu0 %v589_v61 }
  0x84   :  { %872 = vmatprep.subr.mxu1 %v1047_v14  ;;  %885 = vmatprep.subr.mxu0 %v1047_v14 }
  0x85   :  { %873 = vmatpush3.msra.mxu1 %v482_v57  ;;  %886 = vmatpush3.msra.mxu0 %v588_v62 }
  0x86   :  { %887 = vmatprep.subr.mxu0 %v1047_v14 }
  0x87   :  { %888 = vmatpush3.msra.mxu0 %v587_v63 }
  0x88   :  { %889 = vmatprep.subr.mxu0 %v1047_v14 }
  0x89   :  { %890 = vmatpush3.msra.mxu0 %v586_v0 }
  0x8a   :  { %891 = vmatprep.subr.mxu0 %v1047_v14 }
  0x8b   :  { %892 = vmatpush3.msra.mxu0 %v585_v1 }
  0x8c   :  { %893 = vmatprep.subr.mxu0 %v1047_v14 }
  0x8d   :  { %894 = vmatpush3.msra.mxu0 %v584_v2 }
  0x8e   :  { %895 = vmatprep.subr.mxu0 %v1047_v14 }
  0x8f   :  { %896 = vmatpush3.msra.mxu0 %v583_v3 }
  0x90   :  { %897 = vmatprep.subr.mxu0 %v1047_v14 }
  0x91   :  { %898 = vmatpush3.msra.mxu0 %v582_v4 }
  0x92   :  { %899 = vmatprep.subr.mxu0 %v1047_v14 }
  0x93   :  { %900 = vmatpush3.msra.mxu0 %v581_v5 }
  0x94   :  { %901 = vmatprep.subr.mxu0 %v1047_v14 }
  0x95   :  { %902 = vmatpush3.msra.mxu0 %v580_v24 }
  0x96   :  { %903 = vmatprep.subr.mxu0 %v1047_v14 }
  0x97   :  { %904 = vmatpush3.msra.mxu0 %v579_v25 }
  0x98   :  { %905 = vmatprep.subr.mxu0 %v1047_v14 }
  0x99   :  { %906 = vmatpush3.msra.mxu0 %v578_v26 }
  0x9a   :  { %907 = vmatprep.subr.mxu0 %v1047_v14 }
  0x9b   :  { %908 = vmatpush3.msra.mxu0 %v577_v27 }
 0x119   :  { %v725_v10 = vpop.f32.mrf.mxu0 }
 0x11b   :  { %v726_v11 = vpop.f32.mrf.mxu0 }
 0x11c   :  { %v760_v6 = vpop.f32.mrf.mxu1  ;;  %v727_v12 = vadd.f32 %v726_v11, %v725_v10 }
 0x11e   :  { %v761_v7 = vpop.f32.mrf.mxu1  ;;  %v268_v15 = vadd.f32 %v727_v12, %v689_v13 }
 0x11f   :  { %v762_v16 = vadd.f32 %v761_v7, %v760_v6 }
 0x121   :  { %v338_v19 = vadd.f32 %v762_v16, %v268_v15 }
 0x123   :  { %v477_v8 = vpop.f32.mrf.mxu1 }
 0x125   :  { %v841_v9 = vpop.f32.mrf.mxu1 }
 0x13b   :  { %v795_v17 = vpop.f32.mrf.mxu0 }
 0x13d   :  { %v796_v18 = vpop.f32.mrf.mxu0 }
 0x13e   :  { %v797_v20 = vadd.f32 %v796_v18, %v795_v17 }
 0x140   :  { %v408_v21 = vadd.f32 %v797_v20, %v338_v19 }
 0x142   :  { %v478_v22 = vadd.f32 %v477_v8, %v408_v21 }
 0x144   :  { %v481_v23 = vmax.f32 %v478_v22, 0.0 }
 0x146   :  { %875 = vmatmul.mubr.f32.vlgmr.msra.gmra.mxu1 %v481_v23 }
 0x206   :  { %v571_v29 = vpop.f32.mrf.mxu1 }
 0x207   :  { %v572_v30 = vadd.f32 %v691_v28, %v571_v29 }
 0x208   :  { %v876_v31 = vpop.f32.mrf.mxu1 }
 0x209   :  { %v575_v32 = vmax.f32 %v572_v30, 0.0 }
 0x20b   :  { %v576_v33 = vadd.f32 %v575_v32, %v481_v23 }
 0x20d   :  { %910 = vmatmul.mubr.f32.vlgmr.msra.gmra.mxu0 %v576_v33 }
 0x2cd   :  { %v666_v35 = vpop.f32.mrf.mxu0 }
 0x2ce   :  { %v667_v14 = vadd.f32 %v692_v34, %v666_v35 }
 0x2cf   :  { %v911_v36 = vpop.f32.mrf.mxu0 }
 0x2d0   :  { %v670_v37 = vmax.f32 %v667_v14, 0.0 }
 0x2d2   :  { %671 = vst [vmem:[#allocation12] sm:$0xff] %v670_v37 }
 0x2d3   :  { %1021 = shalt.err (!%p1018_p10)
}
 0x2d4   :  { %681 = dma.vmem_to_hbm [thread:$0]  %s679_s9, 128, %s1179_s8, [#allocation6]  }
 0x2d5   :  { %1038 = dma.done.wait [#allocation6], 128  }
 0x2d6   :  { %1039 = vsyncadd [#allocation6], 4294967168 }
 0x2d7   :  { %685 = vsyncpa [#allocation5], 1 }
 0x2d8   :  { %686 = vsyncpa [#allocation8], 1 }
 0x2d9   :  { %687 = vsyncpa [#allocation11], 1 }
 0x2da   :  { %688 = vsyncpa [#allocation6], 1 }

</bundles_post_ra>
